<compile_context>
chip_gen: v7x
topology: tpu7x:2x2x1
jax: 0.10.0
libtpu: 0.0.40
codegen_flags: <defaults>
</compile_context>

<pallas_src>
import functools

import jax
import jax.numpy as jnp
from jax.experimental import pallas as pl
from jax.experimental.pallas import tpu as pltpu


def _round_up(n, m):
    return -(-n // m) * m


def gating_kernel(scale_ref,              # SMEM (1,): logit_scale
                  x_ref,                  # (TB, IN)       original (f32) dtype
                  w1_ref, b1_ref,         # (IN,  Hp), (1, Hp)
                  w2_ref, b2_ref,         # (Hp,  Hp), (1, Hp)
                  w3_ref, b3_ref,         # (Hp,  Hp), (1, Hp)
                  w4_ref, b4_ref,         # (Hp,  Op), (1, Op)  (1/T folded, lane-padded)
                  o_ref,                  # (TB, Op)  lane-dense
                  *, matmul_dtype, approx_recip):
    # In-kernel cast of the activation tile (VPU pack, hidden under DMA/MXU);
    # no separate host-side astype pass over x.
    x = x_ref[...].astype(matmul_dtype)

    # hidden layers: Linear -> ReLU (MXU matmul, f32 accumulate, f32 bias/ReLU)
    h = jnp.dot(x, w1_ref[...], preferred_element_type=jnp.float32) + b1_ref[...]
    h = jnp.maximum(h, 0.0).astype(matmul_dtype)
    h = jnp.dot(h, w2_ref[...], preferred_element_type=jnp.float32) + b2_ref[...]
    h = jnp.maximum(h, 0.0).astype(matmul_dtype)
    h = jnp.dot(h, w3_ref[...], preferred_element_type=jnp.float32) + b3_ref[...]
    h = jnp.maximum(h, 0.0).astype(matmul_dtype)

    # output layer: 1/temperature already folded into w4/b4; padded output
    # lanes carry a -1e30 f32 bias so their exp() is exactly 0 and the
    # 128-lane softmax equals the narrow softmax.
    logits = jnp.dot(h, w4_ref[...], preferred_element_type=jnp.float32) + b4_ref[...]

    z = logits - jnp.max(logits, axis=-1, keepdims=True)
    e = jnp.exp(z)
    denom = jnp.sum(e, axis=-1, keepdims=True)
    # logit_scale folded into the (TB,1) reciprocal (saves a (TB,128) VPU mul).
    inv = pl.reciprocal(denom, approx=approx_recip) * scale_ref[0]
    o_ref[...] = (e * inv).astype(o_ref.dtype)


def prepare_params(params, temperature, *, use_bf16=True, lane_pad=128):
    """One-time host-side transform of raw params.

    - folds 1/temperature into the last layer (softmax(s*(xW+b)) == softmax(x(sW)+sb))
    - pads hidden_dim and out_features to multiples of 128 lanes
      (zero weight rows/cols, zero hidden biases, -1e30 output-pad bias)
    - optionally casts weight matrices to bf16 (MXU-native); biases stay f32.
    """
    f32 = jnp.float32
    inv_t = f32(1.0 / temperature)
    w1 = params["w1"].astype(f32); b1 = params["b1"].astype(f32)
    w2 = params["w2"].astype(f32); b2 = params["b2"].astype(f32)
    w3 = params["w3"].astype(f32); b3 = params["b3"].astype(f32)
    w4 = params["w4"].astype(f32) * inv_t
    b4 = params["b4"].astype(f32) * inv_t

    in_f, H = w1.shape
    O = w4.shape[1]
    Hp = _round_up(H, lane_pad)
    Op = _round_up(O, lane_pad)

    def pad2(a, rows, cols):
        out = jnp.zeros((rows, cols), f32)
        return out.at[:a.shape[0], :a.shape[1]].set(a)

    # Padded hidden lanes: weight cols/rows and biases are 0, so they stay
    # exactly 0 through ReLU and contribute 0 downstream.
    w1p, b1p = pad2(w1, in_f, Hp), pad2(b1, 1, Hp)
    w2p, b2p = pad2(w2, Hp, Hp),   pad2(b2, 1, Hp)
    w3p, b3p = pad2(w3, Hp, Hp),   pad2(b3, 1, Hp)
    w4p = pad2(w4, Hp, Op)
    b4p = jnp.full((1, Op), -1e30, f32).at[:, :O].set(b4)   # stays f32 (exact)

    wdt = jnp.bfloat16 if use_bf16 else f32
    return {
        "w1": w1p.astype(wdt), "b1": b1p,
        "w2": w2p.astype(wdt), "b2": b2p,
        "w3": w3p.astype(wdt), "b3": b3p,
        "w4": w4p.astype(wdt), "b4": b4p,
        "logit_scale": params["logit_scale"].astype(f32),
    }


def gating_network_forward(x, prepped, *, out_features, block_b=512,
                           approx_recip=True, out_dtype=None):
    """x: (B, in_features). prepped: output of prepare_params.

    Returns (B, out_features) in out_dtype (defaults to the matmul dtype)."""
    B, in_f = x.shape
    wdtype = prepped["w1"].dtype
    assert prepped["w1"].shape[0] == in_f, "x feature dim must match w1"
    Hp = prepped["w1"].shape[1]
    Op = prepped["w4"].shape[1]
    if out_dtype is None:
        out_dtype = wdtype

    # Batch tile: no host-side padding of x — Pallas masks the ragged last
    # block on writeback (all ops are row-wise, so garbage rows are harmless).
    block_b = max(8, min(block_b, _round_up(B, 8)))
    # v7x megacore: guarantee >=2 "parallel" grid steps when the batch allows,
    # using the largest tile that still yields 2 steps (minimal extra per-step
    # overhead on single-TC v5e/v6e).
    if B > 128 and pl.cdiv(B, block_b) < 2:
        block_b = max(128, _round_up(pl.cdiv(B, 2), 8))
    grid = (pl.cdiv(B, block_b),)

    # Explicit VMEM budget: single-buffered resident weights + double-buffered
    # x / out tiles + f32 intermediate headroom.
    w_bytes = sum(int(v.size) * v.dtype.itemsize
                  for k, v in prepped.items() if k != "logit_scale")
    est = (w_bytes
           + 2 * block_b * in_f * x.dtype.itemsize
           + 2 * block_b * Op * jnp.dtype(out_dtype).itemsize
           + 4 * block_b * Hp * 4)
    vmem_limit = int(min(128 << 20, max(32 << 20, int(1.25 * est))))

    const = lambda i: (0, 0)
    wspec = lambda shape: pl.BlockSpec(shape, const, pipeline_mode=pl.Buffered(1))
    kern = functools.partial(gating_kernel, matmul_dtype=wdtype,
                             approx_recip=approx_recip)

    out = pl.pallas_call(
        kern,
        out_shape=jax.ShapeDtypeStruct((B, Op), out_dtype),
        grid_spec=pltpu.PrefetchScalarGridSpec(
            num_scalar_prefetch=0,
            grid=grid,
            in_specs=[
                pl.BlockSpec(memory_space=pltpu.MemorySpace.SMEM),   # logit_scale
                pl.BlockSpec((block_b, in_f), lambda i: (i, 0)),     # x tile
                wspec((in_f, Hp)), wspec((1, Hp)),
                wspec((Hp, Hp)),   wspec((1, Hp)),
                wspec((Hp, Hp)),   wspec((1, Hp)),
                wspec((Hp, Op)),   wspec((1, Op)),
            ],
            out_specs=pl.BlockSpec((block_b, Op), lambda i: (i, 0)),  # lane-dense
        ),
        compiler_params=pltpu.CompilerParams(
            dimension_semantics=("parallel",),
            vmem_limit_bytes=vmem_limit),
    )(prepped["logit_scale"], x,
      prepped["w1"], prepped["b1"],
      prepped["w2"], prepped["b2"],
      prepped["w3"], prepped["b3"],
      prepped["w4"], prepped["b4"])

    return out[:, :out_features]


def init_params(key, in_features, out_features, hidden_dim, logit_scale=1.0):
    """Deterministic synthetic init. Weights stored as (in, out) = W.T wrt PyTorch."""
    keys = jax.random.split(key, 8)
    def lin(kw, kb, fan_in, fan_out):
        bound = 1.0 / jnp.sqrt(fan_in)
        w = jax.random.uniform(kw, (fan_in, fan_out), jnp.float32, -bound, bound)
        b = jax.random.uniform(kb, (1, fan_out), jnp.float32, -bound, bound)
        return w, b
    w1, b1 = lin(keys[0], keys[1], in_features, hidden_dim)
    w2, b2 = lin(keys[2], keys[3], hidden_dim, hidden_dim)
    w3, b3 = lin(keys[4], keys[5], hidden_dim, hidden_dim)
    w4, b4 = lin(keys[6], keys[7], hidden_dim, out_features)
    return {
        "w1": w1, "b1": b1, "w2": w2, "b2": b2,
        "w3": w3, "b3": b3, "w4": w4, "b4": b4,
        "logit_scale": jnp.ones((1,), jnp.float32) * logit_scale,
    }


def reference_forward(x, params, temperature):
    dot = functools.partial(jnp.dot, precision=jax.lax.Precision.HIGHEST)
    h = x
    h = jax.nn.relu(dot(h, params["w1"]) + params["b1"])
    h = jax.nn.relu(dot(h, params["w2"]) + params["b2"])
    h = jax.nn.relu(dot(h, params["w3"]) + params["b3"])
    logits = dot(h, params["w4"]) + params["b4"]
    p = jax.nn.softmax(logits / temperature, axis=1)
    return p * params["logit_scale"][0]


if __name__ == "__main__":
    key = jax.random.PRNGKey(0)
    k_x, k_p = jax.random.split(key)

    B, IN, HID, OUT = 8, 32, 32, 4
    TEMPERATURE = 10.0

    x = jax.random.normal(k_x, (B, IN), jnp.float32)
    params = init_params(k_p, IN, OUT, HID, logit_scale=1.0)
    ref = reference_forward(x, params, TEMPERATURE)

    # f32 matmul path with exact reciprocal and f32 output: tight tolerance.
    prepped_f32 = prepare_params(params, TEMPERATURE, use_bf16=False)
    out_f32 = gating_network_forward(x, prepped_f32, out_features=OUT,
                                     approx_recip=False, out_dtype=jnp.float32)
    out_f32 = jax.block_until_ready(out_f32)
    assert out_f32.shape == (B, OUT)
    assert jnp.allclose(out_f32, ref, atol=1e-4, rtol=1e-4), "f32 mismatch vs reference"

    # Default fast path: bf16 matmul inputs (f32 MXU accumulation), approx
    # reciprocal, bf16 lane-dense writeback. Looser tolerance expected; note
    # with approx reciprocal per-row probs do not sum to exactly 1.
    prepped_bf16 = prepare_params(params, TEMPERATURE, use_bf16=True)
    out_bf16 = gating_network_forward(x, prepped_bf16, out_features=OUT)
    out_bf16 = jax.block_until_ready(out_bf16)
    assert out_bf16.shape == (B, OUT)
    assert jnp.allclose(out_bf16.astype(jnp.float32), ref, atol=3e-2, rtol=0), \
        "bf16 mismatch vs reference"

    print("KERNEL_OK")
</pallas_src>

<mosaic_0001>
module attributes {stable_mosaic.version = 11 : i64} {
  func.func @gating_kernel(%arg0: i32, %arg1: memref<1xf32, #tpu.memory_space<smem>>, %arg2: memref<8x32xf32, #tpu.memory_space<vmem>>, %arg3: memref<32x128xf32, #tpu.memory_space<vmem>>, %arg4: memref<1x128xf32, #tpu.memory_space<vmem>>, %arg5: memref<128x128xf32, #tpu.memory_space<vmem>>, %arg6: memref<1x128xf32, #tpu.memory_space<vmem>>, %arg7: memref<128x128xf32, #tpu.memory_space<vmem>>, %arg8: memref<1x128xf32, #tpu.memory_space<vmem>>, %arg9: memref<128x128xf32, #tpu.memory_space<vmem>>, %arg10: memref<1x128xf32, #tpu.memory_space<vmem>>, %arg11: memref<8x128xf32, #tpu.memory_space<vmem>>) attributes {dimension_semantics = [#tpu.dimension_semantics<parallel>], iteration_bounds = array<i64: 1>, scalar_prefetch = 0 : i64, scratch_operands = 0 : i64, tpu.core_type = #tpu.core_type<tc>, window_params = [{transform_indices = @transform_0, window_bounds = array<i64: 1>}, {transform_indices = @transform_1, window_bounds = array<i64: 8, 32>}, {pipeline_mode = #tpu.pipeline_mode<synchronous>, transform_indices = @transform_2, window_bounds = array<i64: 32, 128>}, {pipeline_mode = #tpu.pipeline_mode<synchronous>, transform_indices = @transform_3, window_bounds = array<i64: 1, 128>}, {pipeline_mode = #tpu.pipeline_mode<synchronous>, transform_indices = @transform_4, window_bounds = array<i64: 128, 128>}, {pipeline_mode = #tpu.pipeline_mode<synchronous>, transform_indices = @transform_5, window_bounds = array<i64: 1, 128>}, {pipeline_mode = #tpu.pipeline_mode<synchronous>, transform_indices = @transform_6, window_bounds = array<i64: 128, 128>}, {pipeline_mode = #tpu.pipeline_mode<synchronous>, transform_indices = @transform_7, window_bounds = array<i64: 1, 128>}, {pipeline_mode = #tpu.pipeline_mode<synchronous>, transform_indices = @transform_8, window_bounds = array<i64: 128, 128>}, {pipeline_mode = #tpu.pipeline_mode<synchronous>, transform_indices = @transform_9, window_bounds = array<i64: 1, 128>}, {transform_indices = @transform_10, window_bounds = array<i64: 8, 128>}]} {
    %c0 = arith.constant 0 : index
    %c0_0 = arith.constant 0 : index
    %0 = vector.load %arg2[%c0, %c0_0] : memref<8x32xf32, #tpu.memory_space<vmem>>, vector<8x32xf32>
    %c0_1 = arith.constant 0 : index
    %c0_2 = arith.constant 0 : index
    %1 = vector.load %arg3[%c0_1, %c0_2] : memref<32x128xf32, #tpu.memory_space<vmem>>, vector<32x128xf32>
    %cst = arith.constant dense<0.000000e+00> : vector<8x128xf32>
    %2 = tpu.matmul %0, %1, %cst {dimension_numbers = #tpu.dot_dimension_numbers<[1], [0], [0], [1], [0, 0, 1, 1], [], []>} : vector<8x32xf32>, vector<32x128xf32>, vector<8x128xf32> -> vector<8x128xf32>
    %c0_3 = arith.constant 0 : index
    %c0_4 = arith.constant 0 : index
    %3 = vector.load %arg4[%c0_3, %c0_4] : memref<1x128xf32, #tpu.memory_space<vmem>>, vector<1x128xf32>
    %4 = vector.broadcast %3 : vector<1x128xf32> to vector<8x128xf32>
    %5 = arith.addf %2, %4 : vector<8x128xf32>
    %cst_5 = arith.constant 0.000000e+00 : f32
    %6 = vector.broadcast %cst_5 : f32 to vector<8x128xf32>
    %7 = arith.maximumf %5, %6 : vector<8x128xf32>
    %c0_6 = arith.constant 0 : index
    %c0_7 = arith.constant 0 : index
    %8 = vector.load %arg5[%c0_6, %c0_7] : memref<128x128xf32, #tpu.memory_space<vmem>>, vector<128x128xf32>
    %cst_8 = arith.constant dense<0.000000e+00> : vector<8x128xf32>
    %9 = tpu.matmul %7, %8, %cst_8 {dimension_numbers = #tpu.dot_dimension_numbers<[1], [0], [0], [1], [0, 0, 1, 1], [], []>} : vector<8x128xf32>, vector<128x128xf32>, vector<8x128xf32> -> vector<8x128xf32>
    %c0_9 = arith.constant 0 : index
    %c0_10 = arith.constant 0 : index
    %10 = vector.load %arg6[%c0_9, %c0_10] : memref<1x128xf32, #tpu.memory_space<vmem>>, vector<1x128xf32>
    %11 = vector.broadcast %10 : vector<1x128xf32> to vector<8x128xf32>
    %12 = arith.addf %9, %11 : vector<8x128xf32>
    %cst_11 = arith.constant 0.000000e+00 : f32
    %13 = vector.broadcast %cst_11 : f32 to vector<8x128xf32>
    %14 = arith.maximumf %12, %13 : vector<8x128xf32>
    %c0_12 = arith.constant 0 : index
    %c0_13 = arith.constant 0 : index
    %15 = vector.load %arg7[%c0_12, %c0_13] : memref<128x128xf32, #tpu.memory_space<vmem>>, vector<128x128xf32>
    %cst_14 = arith.constant dense<0.000000e+00> : vector<8x128xf32>
    %16 = tpu.matmul %14, %15, %cst_14 {dimension_numbers = #tpu.dot_dimension_numbers<[1], [0], [0], [1], [0, 0, 1, 1], [], []>} : vector<8x128xf32>, vector<128x128xf32>, vector<8x128xf32> -> vector<8x128xf32>
    %c0_15 = arith.constant 0 : index
    %c0_16 = arith.constant 0 : index
    %17 = vector.load %arg8[%c0_15, %c0_16] : memref<1x128xf32, #tpu.memory_space<vmem>>, vector<1x128xf32>
    %18 = vector.broadcast %17 : vector<1x128xf32> to vector<8x128xf32>
    %19 = arith.addf %16, %18 : vector<8x128xf32>
    %cst_17 = arith.constant 0.000000e+00 : f32
    %20 = vector.broadcast %cst_17 : f32 to vector<8x128xf32>
    %21 = arith.maximumf %19, %20 : vector<8x128xf32>
    %c0_18 = arith.constant 0 : index
    %c0_19 = arith.constant 0 : index
    %22 = vector.load %arg9[%c0_18, %c0_19] : memref<128x128xf32, #tpu.memory_space<vmem>>, vector<128x128xf32>
    %cst_20 = arith.constant dense<0.000000e+00> : vector<8x128xf32>
    %23 = tpu.matmul %21, %22, %cst_20 {dimension_numbers = #tpu.dot_dimension_numbers<[1], [0], [0], [1], [0, 0, 1, 1], [], []>} : vector<8x128xf32>, vector<128x128xf32>, vector<8x128xf32> -> vector<8x128xf32>
    %c0_21 = arith.constant 0 : index
    %c0_22 = arith.constant 0 : index
    %24 = vector.load %arg10[%c0_21, %c0_22] : memref<1x128xf32, #tpu.memory_space<vmem>>, vector<1x128xf32>
    %25 = vector.broadcast %24 : vector<1x128xf32> to vector<8x128xf32>
    %26 = arith.addf %23, %25 : vector<8x128xf32>
    %cst_23 = arith.constant dense<0xFF800000> : vector<8xf32>
    %27 = vector.multi_reduction <maximumf>, %26, %cst_23 [1] : vector<8x128xf32> to vector<8xf32>
    %28 = vector.shape_cast %27 : vector<8xf32> to vector<8x1xf32>
    %29 = vector.broadcast %28 : vector<8x1xf32> to vector<8x128xf32>
    %30 = arith.subf %26, %29 : vector<8x128xf32>
    %31 = math.exp %30 : vector<8x128xf32>
    %cst_24 = arith.constant dense<0.000000e+00> : vector<8xf32>
    %32 = vector.multi_reduction <add>, %31, %cst_24 [1] : vector<8x128xf32> to vector<8xf32>
    %33 = vector.shape_cast %32 : vector<8xf32> to vector<8x1xf32>
    %34 = tpu.reciprocal %33 : vector<8x1xf32> -> vector<8x1xf32>
    %c0_25 = arith.constant 0 : index
    %35 = memref.load %arg1[%c0_25] : memref<1xf32, #tpu.memory_space<smem>>
    %36 = vector.broadcast %35 : f32 to vector<8x1xf32>
    %37 = arith.mulf %34, %36 : vector<8x1xf32>
    %38 = vector.broadcast %37 : vector<8x1xf32> to vector<8x128xf32>
    %39 = arith.mulf %31, %38 : vector<8x128xf32>
    %c0_26 = arith.constant 0 : index
    %c0_27 = arith.constant 0 : index
    %40 = vector.load %arg11[%c0_26, %c0_27] : memref<8x128xf32, #tpu.memory_space<vmem>>, vector<8x128xf32>
    tpu.vector_store %arg11[%c0_26, %c0_27], %39 {strides = array<i32>} : memref<8x128xf32, #tpu.memory_space<vmem>>, vector<8x128xf32>,
    return
  }
  func.func @transform_0(%arg0: i32) -> i32 {
    %c0_i32 = arith.constant 0 : i32
    %c0_i32_0 = arith.constant 0 : i32
    return %c0_i32 : i32
  }
  func.func @transform_1(%arg0: i32) -> (i32, i32) {
    %c0_i32 = arith.constant 0 : i32
    %c0_i32_0 = arith.constant 0 : i32
    return %arg0, %c0_i32 : i32, i32
  }
  func.func @transform_2(%arg0: i32) -> (i32, i32) {
    %c0_i32 = arith.constant 0 : i32
    %c0_i32_0 = arith.constant 0 : i32
    %c0_i32_1 = arith.constant 0 : i32
    return %c0_i32, %c0_i32_0 : i32, i32
  }
  func.func @transform_3(%arg0: i32) -> (i32, i32) {
    %c0_i32 = arith.constant 0 : i32
    %c0_i32_0 = arith.constant 0 : i32
    %c0_i32_1 = arith.constant 0 : i32
    return %c0_i32, %c0_i32_0 : i32, i32
  }
  func.func @transform_4(%arg0: i32) -> (i32, i32) {
    %c0_i32 = arith.constant 0 : i32
    %c0_i32_0 = arith.constant 0 : i32
    %c0_i32_1 = arith.constant 0 : i32
    return %c0_i32, %c0_i32_0 : i32, i32
  }
  func.func @transform_5(%arg0: i32) -> (i32, i32) {
    %c0_i32 = arith.constant 0 : i32
    %c0_i32_0 = arith.constant 0 : i32
    %c0_i32_1 = arith.constant 0 : i32
    return %c0_i32, %c0_i32_0 : i32, i32
  }
  func.func @transform_6(%arg0: i32) -> (i32, i32) {
    %c0_i32 = arith.constant 0 : i32
    %c0_i32_0 = arith.constant 0 : i32
    %c0_i32_1 = arith.constant 0 : i32
    return %c0_i32, %c0_i32_0 : i32, i32
  }
  func.func @transform_7(%arg0: i32) -> (i32, i32) {
    %c0_i32 = arith.constant 0 : i32
    %c0_i32_0 = arith.constant 0 : i32
    %c0_i32_1 = arith.constant 0 : i32
    return %c0_i32, %c0_i32_0 : i32, i32
  }
  func.func @transform_8(%arg0: i32) -> (i32, i32) {
    %c0_i32 = arith.constant 0 : i32
    %c0_i32_0 = arith.constant 0 : i32
    %c0_i32_1 = arith.constant 0 : i32
    return %c0_i32, %c0_i32_0 : i32, i32
  }
  func.func @transform_9(%arg0: i32) -> (i32, i32) {
    %c0_i32 = arith.constant 0 : i32
    %c0_i32_0 = arith.constant 0 : i32
    %c0_i32_1 = arith.constant 0 : i32
    return %c0_i32, %c0_i32_0 : i32, i32
  }
  func.func @transform_10(%arg0: i32) -> (i32, i32) {
    %c0_i32 = arith.constant 0 : i32
    %c0_i32_0 = arith.constant 0 : i32
    return %arg0, %c0_i32 : i32, i32
  }
}

</mosaic_0001>

<bundles_post_ra>
// kernel: tpu_custom_call.1
= control target key start
LH: loop header
LB: loop body
LE: loop exit
PB: predicated region body
PF: predicated region fallthrough
CT: control target
= control target key end

     0   :  { %16 = vsyncpa [#allocation4], 0  ;;  %s1110_s0 = inlined_call_operand.<no memory space> [shape: f32[1], index: 0, kind: input, shape index: {}]   ;;  %s1111_s1 = inlined_call_operand.hbm [shape: f32[8,32], index: 1, kind: input, shape index: {}]   ;;  %s1112_s2 = inlined_call_operand.hbm [shape: f32[32,128], index: 2, kind: input, shape index: {}]   ;;  %s1113_s3 = inlined_call_operand.vmem [shape: f32[1,128], index: 3, kind: input, shape index: {}]   ;;  %s1114_s4 = inlined_call_operand.hbm [shape: f32[128,128], index: 4, kind: input, shape index: {}]   ;;  %s1115_s5 = inlined_call_operand.vmem [shape: f32[1,128], index: 5, kind: input, shape index: {}]   ;;  %s1116_s6 = inlined_call_operand.hbm [shape: f32[128,128], index: 6, kind: input, shape index: {}]   ;;  %s1117_s7 = inlined_call_operand.vmem [shape: f32[1,128], index: 7, kind: input, shape index: {}]   ;;  %s1118_s8 = inlined_call_operand.hbm [shape: f32[128,128], index: 8, kind: input, shape index: {}]   ;;  %s1119_s9 = inlined_call_operand.vmem [shape: f32[1,128], index: 9, kind: input, shape index: {}]   ;;  %s1120_s10 = inlined_call_operand.hbm [shape: f32[8,128], index: 10, kind: output, shape index: {}]  }
   0x1   :  { %17 = vsyncpa [#allocation7], 0 }
   0x2   :  { %18 = vsyncpa [#allocation10], 0 }
   0x3   :  { %19 = vsyncpa [#allocation5], 0  ;;  %s911_s13 = smov [#allocation6]   ;;  %s771_s17 = scalar_lea.hbm %s1112_s2, 512 }
   0x4   :  { %s37_s14 = sshll.u32 %s911_s13, 4  ;;  %p772_p0 = scmp.ne.s32.totalorder %s1112_s2, %s771_s17  ;;  %s38_s14 = int_to_ptr.vmem [resolvable:$true] %s37_s14 }
   0x5   :  { %p775_p1 = scmp.lt.u32.totalorder %s771_s17, %s1112_s2 }
   0x7   :  { %p777_p2 = pnand %p775_p1, %p772_p0 }
   0x9   :  { %780 = shalt.err (!%p777_p2)
}
   0xa   :  { %s781_s22 = scalar_lea.vmem %s38_s14, 512  ;;  %p786_p4 = scmp.lt.s32.totalorder %s38_s14, %s38_s14 }
   0xb   :  { %p782_p3 = scmp.ne.s32.totalorder %s38_s14, %s781_s22  ;;  %p787_p5 = scmp.lt.s32.totalorder %s781_s22, %s781_s22 }
   0xd   :  { %p788_p6 = por %p787_p5, %p786_p4 }
   0xf   :  { %p789_p7 = pnand %p788_p6, %p782_p3 }
  0x11   :  { %792 = shalt.err (!%p789_p7)
}
  0x12   :  { %s912_s23 = smov 128   ;;  %s913_s24 = smov 8  }
  0x13   :  { %43 = dma.hbm_to_vmem [thread:$0]  %s1112_s2, 512, %s38_s14, [#allocation7], %s912_s23, %s912_s23, %s913_s24  }
  0x14   :  { %s914_s27 = smov [#allocation9]   ;;  %s915_s29 = smov [#allocation3]  }
  0x15   :  { %s65_s28 = sshll.u32 %s914_s27, 4  ;;  %s28_s30 = sshll.u32 %s915_s29, 4  ;;  %s66_s28 = int_to_ptr.vmem [resolvable:$true] %s65_s28  ;;  %s29_s30 = int_to_ptr.vmem [resolvable:$true] %s28_s30 }
  0x16   :  { %s793_s13 = scalar_lea.hbm %s1116_s6, 2048 }
  0x17   :  { %p794_p8 = scmp.ne.s32.totalorder %s1116_s6, %s793_s13  ;;  %p797_p9 = scmp.lt.u32.totalorder %s793_s13, %s1116_s6 }
  0x19   :  { %p799_p10 = pnand %p797_p9, %p794_p8 }
  0x1b   :  { %802 = shalt.err (!%p799_p10)
}
  0x1c   :  { %s803_s2 = scalar_lea.vmem %s66_s28, 2048  ;;  %p808_p12 = scmp.lt.s32.totalorder %s66_s28, %s66_s28 }
  0x1d   :  { %p804_p11 = scmp.ne.s32.totalorder %s66_s28, %s803_s2  ;;  %p809_p13 = scmp.lt.s32.totalorder %s803_s2, %s803_s2 }
  0x1f   :  { %p810_p0 = por %p809_p13, %p808_p12 }
  0x21   :  { %p811_p1 = pnand %p810_p0, %p804_p11 }
  0x23   :  { %814 = shalt.err (!%p811_p1)
}
  0x24   :  { %71 = dma.hbm_to_vmem [thread:$0]  %s1116_s6, 2048, %s66_s28, [#allocation10], %s912_s23, %s912_s23, %s913_s24  }
  0x25   :  { %s815_s22 = scalar_lea.hbm %s1111_s1, 128 }
  0x26   :  { %p816_p2 = scmp.ne.s32.totalorder %s1111_s1, %s815_s22  ;;  %p819_p3 = scmp.lt.u32.totalorder %s815_s22, %s1111_s1 }
  0x28   :  { %p821_p4 = pnand %p819_p3, %p816_p2 }
  0x2a   :  { %824 = shalt.err (!%p821_p4)
}
  0x2b   :  { %s825_s11 = scalar_lea.vmem %s29_s30, 128  ;;  %p830_p6 = scmp.lt.s32.totalorder %s29_s30, %s29_s30 }
  0x2c   :  { %p826_p5 = scmp.ne.s32.totalorder %s29_s30, %s825_s11  ;;  %p831_p7 = scmp.lt.s32.totalorder %s825_s11, %s825_s11 }
  0x2e   :  { %p832_p8 = por %p831_p7, %p830_p6 }
  0x30   :  { %p833_p9 = pnand %p832_p8, %p826_p5 }
  0x32   :  { %836 = shalt.err (!%p833_p9)
}
  0x33   :  { %31 = dma.hbm_to_vmem [thread:$0]  %s1111_s1, 128, %s29_s30, [#allocation4]  }
  0x34   :  { %s916_s12 = smov [#allocation8]   ;;  %s917_s15 = smov [#allocation11]  }
  0x35   :  { %s51_s13 = sshll.u32 %s916_s12, 4  ;;  %s79_s16 = sshll.u32 %s917_s15, 4  ;;  %s52_s13 = int_to_ptr.vmem [resolvable:$true] %s51_s13  ;;  %s80_s16 = int_to_ptr.vmem [resolvable:$true] %s79_s16 }
  0x36   :  { %s837_s2 = scalar_lea.hbm %s1114_s4, 2048 }
  0x37   :  { %p838_p10 = scmp.ne.s32.totalorder %s1114_s4, %s837_s2  ;;  %p841_p11 = scmp.lt.u32.totalorder %s837_s2, %s1114_s4 }
  0x39   :  { %p843_p12 = pnand %p841_p11, %p838_p10 }
  0x3b   :  { %846 = shalt.err (!%p843_p12)
}
  0x3c   :  { %s847_s1 = scalar_lea.vmem %s52_s13, 2048  ;;  %p852_p0 = scmp.lt.s32.totalorder %s52_s13, %s52_s13 }
  0x3d   :  { %p848_p13 = scmp.ne.s32.totalorder %s52_s13, %s847_s1  ;;  %p853_p1 = scmp.lt.s32.totalorder %s847_s1, %s847_s1 }
  0x3f   :  { %p854_p2 = por %p853_p1, %p852_p0 }
  0x41   :  { %p855_p3 = pnand %p854_p2, %p848_p13 }
  0x43   :  { %858 = shalt.err (!%p855_p3)
}
  0x44   :  { %57 = dma.hbm_to_vmem [thread:$0]  %s1114_s4, 2048, %s52_s13, [#allocation7], %s912_s23, %s912_s23, %s913_s24  }
  0x45   :  { %s859_s27 = scalar_lea.hbm %s1118_s8, 2048 }
  0x46   :  { %p860_p4 = scmp.ne.s32.totalorder %s1118_s8, %s859_s27  ;;  %p863_p5 = scmp.lt.u32.totalorder %s859_s27, %s1118_s8 }
  0x48   :  { %p865_p6 = pnand %p863_p5, %p860_p4 }
  0x4a   :  { %868 = shalt.err (!%p865_p6)
}
  0x4b   :  { %s869_s12 = scalar_lea.vmem %s80_s16, 2048  ;;  %p874_p8 = scmp.lt.s32.totalorder %s80_s16, %s80_s16 }
  0x4c   :  { %p870_p7 = scmp.ne.s32.totalorder %s80_s16, %s869_s12  ;;  %p875_p9 = scmp.lt.s32.totalorder %s869_s12, %s869_s12 }
  0x4e   :  { %p876_p10 = por %p875_p9, %p874_p8 }
  0x50   :  { %p877_p11 = pnand %p876_p10, %p870_p7 }
  0x52   :  { %880 = shalt.err (!%p877_p11)
}
  0x53   :  { %85 = dma.hbm_to_vmem [thread:$0]  %s1118_s8, 2048, %s80_s16, [#allocation10], %s912_s23, %s912_s23, %s913_s24  }
  0x54   :  { %903 = dma.done.wait [#allocation4], 128  }
  0x55   :  { %904 = vsyncadd [#allocation4], 4294967168 }
  0x56   :  { %905 = dma.done.wait [#allocation7], 2560  }
  0x57   :  { %906 = vsyncadd [#allocation7], 4294964736 }
  0x58   :  { %907 = dma.done.wait [#allocation10], 4096  }
  0x59   :  { %908 = vsyncadd [#allocation10], 4294963200  ;;  %v918_v0 = vmov 0.0|0.0   ;;  %vm919_vm0 = vmmov 0   ;;  %v920_v1 = vmov 0.0   ;;  %v104_v2 = vld [vmem:[#allocation6] sm:$0xff] }
  0x5a   :  { %678 = vmatprep.subr.bf16.mxu0 %v918_v0  ;;  %570 = vmatprep.mubr.msk.f32.mxu0 %vm919_vm0, %v920_v1  ;;  %v105_v3 = vld [vmem:[#allocation6 + $0x8] sm:$0xff]  ;;  %v106_v4 = vld [vmem:[#allocation6 + $0x10] sm:$0xff]  ;;  %v107_v6 = vld [vmem:[#allocation6 + $0x18] sm:$0xff]  ;;  %vm115_vm1 = vcmask 261120   ;;  %s921_s2 = smov [#allocation12]  }
  0x5b   :  { %684 = vmatprep.subr.bf16.mxu1 %v918_v0  ;;  %605 = vmatprep.mubr.msk.f32.mxu1 %vm919_vm0, %v920_v1  ;;  %v679_v5 = vpack.c.bf16 %v105_v3, %v104_v2  ;;  %v190_v7 = vld [vmem:[#allocation8] sm:$0xff]  ;;  %v191_v8 = vld [vmem:[#allocation8 + $0x8] sm:$0xff]  ;;  %v192_v9 = vld [vmem:[#allocation8 + $0x10] sm:$0xff]  ;;  %v682_v11 = vpack.c.bf16 %v107_v6, %v106_v4  ;;  %s490_s14 = sshll.u32 %s921_s2, 4  ;;  %s491_s14 = int_to_ptr.vmem [resolvable:$true] %s490_s14 }
  0x5c   :  { %v193_v10 = vld [vmem:[#allocation8 + $0x18] sm:$0xff]  ;;  %v685_v12 = vpack.c.bf16 %v191_v8, %v190_v7  ;;  %v194_v14 = vld [vmem:[#allocation8 + $0x20] sm:$0xff]  ;;  %v195_v15 = vld [vmem:[#allocation8 + $0x28] sm:$0xff]  ;;  %p886_p13 = scmp.lt.s32.totalorder %s491_s14, %s491_s14 }
  0x5d   :  { %680 = vmatpush3.bf16.msra.mxu0 %v679_v5  ;;  %v688_v13 = vpack.c.bf16 %v193_v10, %v192_v9  ;;  %v103_v16 = vld [vmem:[#allocation3] sm:$0xff]  ;;  %v691_v17 = vpack.c.bf16 %v195_v15, %v194_v14  ;;  %v196_v18 = vld [vmem:[#allocation8 + $0x30] sm:$0xff]  ;;  %v198_v21 = vld [vmem:[#allocation8 + $0x40] sm:$0xff] }
  0x5e   :  { %681 = vmatprep.subr.bf16.mxu0 %v918_v0  ;;  %686 = vmatpush3.bf16.msra.mxu1 %v685_v12  ;;  %v197_v19 = vld [vmem:[#allocation8 + $0x38] sm:$0xff]  ;;  %v199_v22 = vld [vmem:[#allocation8 + $0x48] sm:$0xff]  ;;  %v200_v24 = vld [vmem:[#allocation8 + $0x50] sm:$0xff] }
  0x5f   :  { %687 = vmatprep.subr.bf16.mxu1 %v918_v0  ;;  %v694_v20 = vpack.c.bf16 %v197_v19, %v196_v18  ;;  %v697_v23 = vpack.c.bf16 %v199_v22, %v198_v21  ;;  %v201_v25 = vld [vmem:[#allocation8 + $0x58] sm:$0xff]  ;;  %v202_v27 = vld [vmem:[#allocation8 + $0x60] sm:$0xff]  ;;  %v203_v28 = vld [vmem:[#allocation8 + $0x68] sm:$0xff] }
  0x60   :  { %v700_v26 = vpack.c.bf16 %v201_v25, %v200_v24  ;;  %v703_v29 = vpack.c.bf16 %v203_v28, %v202_v27  ;;  %v204_v30 = vld [vmem:[#allocation8 + $0x70] sm:$0xff]  ;;  %v205_v31 = vld [vmem:[#allocation8 + $0x78] sm:$0xff]  ;;  %v284_v33 = vld [vmem:[#allocation9] sm:$0xff] }
  0x61   :  { %683 = vmatpush3.bf16.msra.mxu0 %v682_v11  ;;  %v706_v32 = vpack.c.bf16 %v205_v31, %v204_v30  ;;  %v285_v34 = vld [vmem:[#allocation9 + $0x8] sm:$0xff]  ;;  %v286_v35 = vld [vmem:[#allocation9 + $0x10] sm:$0xff]  ;;  %v287_v37 = vld [vmem:[#allocation9 + $0x18] sm:$0xff] }
  0x62   :  { %708 = vmatprep.subr.bf16.mxu0 %v918_v0  ;;  %689 = vmatpush3.bf16.msra.mxu1 %v688_v13  ;;  %v709_v36 = vpack.c.bf16 %v285_v34, %v284_v33  ;;  %v712_v38 = vpack.c.bf16 %v287_v37, %v286_v35  ;;  %v288_v39 = vld [vmem:[#allocation9 + $0x20] sm:$0xff]  ;;  %v289_v40 = vld [vmem:[#allocation9 + $0x28] sm:$0xff]  ;;  %v290_v42 = vld [vmem:[#allocation9 + $0x30] sm:$0xff] }
  0x63   :  { %690 = vmatprep.subr.bf16.mxu1 %v918_v0  ;;  %v715_v41 = vpack.c.bf16 %v289_v40, %v288_v39  ;;  %v291_v43 = vld [vmem:[#allocation9 + $0x38] sm:$0xff]  ;;  %v292_v45 = vld [vmem:[#allocation9 + $0x40] sm:$0xff]  ;;  %v293_v46 = vld [vmem:[#allocation9 + $0x48] sm:$0xff] }
  0x64   :  { %571 = vmatmul.mubr.msk.f32.vlgmr.msra.gmra.mrb[0].mxu0 %vm115_vm1, %v103_v16  ;;  %v718_v44 = vpack.c.bf16 %v291_v43, %v290_v42  ;;  %v721_v47 = vpack.c.bf16 %v293_v46, %v292_v45  ;;  %v294_v48 = vld [vmem:[#allocation9 + $0x50] sm:$0xff]  ;;  %v295_v49 = vld [vmem:[#allocation9 + $0x58] sm:$0xff]  ;;  %v296_v51 = vld [vmem:[#allocation9 + $0x60] sm:$0xff] }
  0x65   :  { %640 = vmatprep.mubr.msk.f32.mxu0 %vm919_vm0, %v920_v1  ;;  %710 = vmatpush3.bf16.msra.mxu0 %v709_v36  ;;  %v724_v50 = vpack.c.bf16 %v295_v49, %v294_v48  ;;  %v297_v52 = vld [vmem:[#allocation9 + $0x68] sm:$0xff]  ;;  %v501_v54 = vld [vmem:[%s1113_s3] ss:$0 sm:$0xff]  ;;  %v298_v59 = vld [vmem:[#allocation9 + $0x70] sm:$0xff] }
  0x66   :  { %692 = vmatpush3.bf16.msra.mxu1 %v691_v17  ;;  %711 = vmatprep.subr.bf16.mxu0 %v918_v0  ;;  %v727_v53 = vpack.c.bf16 %v297_v52, %v296_v51  ;;  %v299_v60 = vld [vmem:[#allocation9 + $0x78] sm:$0xff]  ;;  %v378_v62 = vld [vmem:[#allocation11] sm:$0xff]  ;;  %v379_v63 = vld [vmem:[#allocation11 + $0x8] sm:$0xff] }
  0x67   :  { %693 = vmatprep.subr.bf16.mxu1 %v918_v0  ;;  %v730_v61 = vpack.c.bf16 %v299_v60, %v298_v59  ;;  %v380_v2 = vld [vmem:[#allocation11 + $0x10] sm:$0xff]  ;;  %v733_v3 = vpack.c.bf16 %v379_v63, %v378_v62  ;;  %v381_v4 = vld [vmem:[#allocation11 + $0x18] sm:$0xff]  ;;  %v382_v6 = vld [vmem:[#allocation11 + $0x20] sm:$0xff] }
  0x68   :  { %v736_v5 = vpack.c.bf16 %v381_v4, %v380_v2  ;;  %v383_v7 = vld [vmem:[#allocation11 + $0x28] sm:$0xff]  ;;  %v385_v9 = vld [vmem:[#allocation11 + $0x38] sm:$0xff]  ;;  %v386_v11 = vld [vmem:[#allocation11 + $0x40] sm:$0xff] }
  0x69   :  { %713 = vmatpush3.bf16.msra.mxu0 %v712_v38  ;;  %v739_v8 = vpack.c.bf16 %v383_v7, %v382_v6  ;;  %v387_v12 = vld [vmem:[#allocation11 + $0x48] sm:$0xff]  ;;  %v388_v14 = vld [vmem:[#allocation11 + $0x50] sm:$0xff]  ;;  %v389_v15 = vld [vmem:[#allocation11 + $0x58] sm:$0xff] }
  0x6a   :  { %695 = vmatpush3.bf16.msra.mxu1 %v694_v20  ;;  %714 = vmatprep.subr.bf16.mxu0 %v918_v0  ;;  %v745_v13 = vpack.c.bf16 %v387_v12, %v386_v11  ;;  %v748_v16 = vpack.c.bf16 %v389_v15, %v388_v14  ;;  %v390_v17 = vld [vmem:[#allocation11 + $0x60] sm:$0xff]  ;;  %v391_v18 = vld [vmem:[#allocation11 + $0x68] sm:$0xff]  ;;  %v503_v20 = vld [vmem:[%s1115_s5] ss:$0 sm:$0xff] }
  0x6b   :  { %696 = vmatprep.subr.bf16.mxu1 %v918_v0  ;;  %v751_v19 = vpack.c.bf16 %v391_v18, %v390_v17  ;;  %v392_v25 = vld [vmem:[#allocation11 + $0x70] sm:$0xff]  ;;  %v504_v28 = vld [vmem:[%s1117_s7] ss:$0 sm:$0xff] }
  0x6d   :  { %716 = vmatpush3.bf16.msra.mxu0 %v715_v41  ;;  %v480_v41 = vstv %s1110_s0 }
  0x6e   :  { %698 = vmatpush3.bf16.msra.mxu1 %v697_v23  ;;  %717 = vmatprep.subr.bf16.mxu0 %v918_v0 }
  0x6f   :  { %699 = vmatprep.subr.bf16.mxu1 %v918_v0 }
  0x71   :  { %719 = vmatpush3.bf16.msra.mxu0 %v718_v44 }
  0x72   :  { %701 = vmatpush3.bf16.msra.mxu1 %v700_v26  ;;  %720 = vmatprep.subr.bf16.mxu0 %v918_v0  ;;  %v393_v26 = vld [vmem:[#allocation11 + $0x78] sm:$0xff] }
  0x73   :  { %702 = vmatprep.subr.bf16.mxu1 %v918_v0  ;;  %v754_v27 = vpack.c.bf16 %v393_v26, %v392_v25 }
  0x75   :  { %722 = vmatpush3.bf16.msra.mxu0 %v721_v47 }
  0x76   :  { %704 = vmatpush3.bf16.msra.mxu1 %v703_v29  ;;  %723 = vmatprep.subr.bf16.mxu0 %v918_v0 }
  0x77   :  { %705 = vmatprep.subr.bf16.mxu1 %v918_v0 }
  0x79   :  { %725 = vmatpush3.bf16.msra.mxu0 %v724_v50 }
  0x7a   :  { %707 = vmatpush3.bf16.msra.mxu1 %v706_v32  ;;  %726 = vmatprep.subr.bf16.mxu0 %v918_v0  ;;  %v505_v32 = vld [vmem:[%s1119_s9] ss:$0 sm:$0xff]  ;;  %s881_s9 = scalar_lea.vmem %s491_s14, 128 }
  0x7b   :  { %732 = vmatprep.subr.bf16.mxu1 %v918_v0  ;;  %p882_p12 = scmp.ne.s32.totalorder %s491_s14, %s881_s9  ;;  %p887_p0 = scmp.lt.s32.totalorder %s881_s9, %s881_s9 }
  0x7d   :  { %728 = vmatpush3.bf16.msra.mxu0 %v727_v53  ;;  %p888_p1 = por %p887_p0, %p886_p13 }
  0x7e   :  { %729 = vmatprep.subr.bf16.mxu0 %v918_v0 }
  0x7f   :  { %p889_p2 = pnand %p888_p1, %p882_p12 }
  0x81   :  { %731 = vmatpush3.bf16.msra.mxu0 %v730_v61 }
 0x137   :  { %v185_v55 = vpop.f32.mrb[0].mxu0 }
 0x138   :  { %v186_v56 = vadd.f32 %v501_v54, %v185_v55  ;;  %v572_v57 = vpop.f32.mrb[1].mxu0 }
 0x13a   :  { %v189_v58 = vmax.f32 %v186_v56, 0.0 }
 0x13c   :  { %606 = vmatmul.mubr.f32.vlgmr.msra.gmra.mrb[0].mxu1 %v189_v58 }
 0x13d   :  { %675 = vmatprep.mubr.msk.f32.mxu1 %vm919_vm0, %v920_v1  ;;  %734 = vmatpush3.bf16.msra.mxu1 %v733_v3  ;;  %v384_v1 = vld [vmem:[#allocation11 + $0x30] sm:$0xff] }
 0x13e   :  { %735 = vmatprep.subr.bf16.mxu1 %v918_v0  ;;  %v742_v10 = vpack.c.bf16 %v385_v9, %v384_v1 }
 0x141   :  { %737 = vmatpush3.bf16.msra.mxu1 %v736_v5 }
 0x142   :  { %738 = vmatprep.subr.bf16.mxu1 %v918_v0 }
 0x145   :  { %740 = vmatpush3.bf16.msra.mxu1 %v739_v8 }
 0x146   :  { %741 = vmatprep.subr.bf16.mxu1 %v918_v0 }
 0x149   :  { %743 = vmatpush3.bf16.msra.mxu1 %v742_v10 }
 0x14a   :  { %744 = vmatprep.subr.bf16.mxu1 %v918_v0 }
 0x14d   :  { %746 = vmatpush3.bf16.msra.mxu1 %v745_v13 }
 0x14e   :  { %747 = vmatprep.subr.bf16.mxu1 %v918_v0 }
 0x151   :  { %749 = vmatpush3.bf16.msra.mxu1 %v748_v16 }
 0x152   :  { %750 = vmatprep.subr.bf16.mxu1 %v918_v0 }
 0x155   :  { %752 = vmatpush3.bf16.msra.mxu1 %v751_v19 }
 0x156   :  { %753 = vmatprep.subr.bf16.mxu1 %v918_v0 }
 0x159   :  { %755 = vmatpush3.bf16.msra.mxu1 %v754_v27 }
 0x20f   :  { %v279_v21 = vpop.f32.mrb[0].mxu1 }
 0x210   :  { %v280_v22 = vadd.f32 %v503_v20, %v279_v21  ;;  %v607_v23 = vpop.f32.mrb[1].mxu1 }
 0x212   :  { %v283_v24 = vmax.f32 %v280_v22, 0.0 }
 0x214   :  { %641 = vmatmul.mubr.f32.vlgmr.msra.gmra.mrb[2].mxu0 %v283_v24 }
 0x2e7   :  { %v373_v29 = vpop.f32.mrb[2].mxu0 }
 0x2e8   :  { %v374_v30 = vadd.f32 %v504_v28, %v373_v29  ;;  %v642_v0 = vpop.f32.mrb[3].mxu0 }
 0x2ea   :  { %v377_v31 = vmax.f32 %v374_v30, 0.0 }
 0x2ec   :  { %676 = vmatmul.mubr.f32.vlgmr.msra.gmra.mrb[2].mxu1 %v377_v31 }
 0x3bf   :  { %v467_v33 = vpop.f32.mrb[2].mxu1 }
 0x3c0   :  { %v468_v34 = vadd.f32 %v505_v32, %v467_v33  ;;  %v677_v35 = vpop.f32.mrb[3].mxu1 }
 0x3c2   :  { %471 = vmax.xlane.f32.xlu0 %v468_v34 }
 0x44f   :  { %v472_v36 = vpop.xlane.xlu0 %471 }
 0x450   :  { %v473_v37 = vsub.f32 %v468_v34, %v472_v36 }
 0x452   :  { %v474_v38 = vmul.f32 1.442695, %v473_v37 }
 0x454   :  { %767 = vpow2.f32 %v474_v38 }
 0x45e   :  { %v768_v39 = vpop.eup %767 }
 0x45f   :  { %476 = vadd.xlane.f32.xlu0 %v768_v39 }
 0x4ec   :  { %v477_v40 = vpop.xlane.xlu0 %476 }
 0x4ed   :  { %769 = vrcp.f32 %v477_v40 }
 0x4f7   :  { %v770_v42 = vpop.eup %769 }
 0x4f8   :  { %v481_v43 = vmul.f32 %v770_v42, %v480_v41 }
 0x4fa   :  { %v482_v44 = vmul.f32 %v768_v39, %v481_v43 }
 0x4fc   :  { %483 = vst [vmem:[#allocation12] sm:$0xff] %v482_v44 }
 0x4fd   :  { %892 = shalt.err (!%p889_p2)
}
 0x4fe   :  { %s893_s21 = scalar_lea.hbm %s1120_s10, 128 }
 0x4ff   :  { %p894_p3 = scmp.ne.s32.totalorder %s1120_s10, %s893_s21  ;;  %p897_p4 = scmp.lt.u32.totalorder %s893_s21, %s1120_s10 }
 0x501   :  { %p899_p5 = pnand %p897_p4, %p894_p3 }
 0x503   :  { %902 = shalt.err (!%p899_p5)
}
 0x504   :  { %493 = dma.vmem_to_hbm [thread:$0]  %s491_s14, 128, %s1120_s10, [#allocation5]  }
 0x505   :  { %909 = dma.done.wait [#allocation5], 128  }
 0x506   :  { %910 = vsyncadd [#allocation5], 4294967168 }
 0x507   :  { %497 = vsyncpa [#allocation4], 1 }
 0x508   :  { %498 = vsyncpa [#allocation7], 1 }
 0x509   :  { %499 = vsyncpa [#allocation10], 1 }
 0x50a   :  { %500 = vsyncpa [#allocation5], 1 }

</bundles_post_ra>
